<compile_context>
chip_gen: v7x
topology: tpu7x:2x2x1
jax: 0.10.0
libtpu: 0.0.40
codegen_flags: <defaults>
</compile_context>

<pallas_src>
import numpy as np
import jax
import jax.numpy as jnp
from jax import lax
from jax.experimental import pallas as pl
from jax.experimental.pallas import tpu as pltpu

# ---------------- problem sizes (small, consistent with the module) ---------
B = 2          # batch
L = 16         # input sequence length
C = 32         # channels (c_in == d_model)
K = 3          # conv kernel size
PAD = 2        # conv circular padding
EPS = 1e-5     # BatchNorm1d default eps

LC = L + 2 * PAD - K + 1                                # conv output length = 18
POOL_K, POOL_S, POOL_P = 3, 2, 1
L_OUT = (LC + 2 * POOL_P - POOL_K) // POOL_S + 1        # pooled length = 9

R_IN = B * L                                            # 32 flattened input rows
R_CONV = B * LC                                         # 36 flattened conv rows
R_OUT = B * L_OUT                                       # 18 flattened output rows


def conv_layer_kernel(x_ref, w_ref, shift_ref, out_ref, act_ref):
    """Single-invocation kernel: the whole (B*L, C) problem lives in VMEM.

    x_ref    : (B*L, C)      input, channels-last, batches stacked on sublanes
    w_ref    : (K*C, C)      conv weights with BN(eval) scale folded in
    shift_ref: (1, C)        (conv_bias - running_mean) * scale + beta
    out_ref  : (B*L_OUT, C)  pooled output
    act_ref  : (B*LC, C)     VMEM scratch holding the ELU activation
    """
    shift = shift_ref[...]                              # (1, C)

    # ---- im2col LHS (B*LC, K*C): lanes [k*C:(k+1)*C] hold tap-k's window ----
    # Tap k window (circular pad=2) is  [ x[L-(PAD-k):],  x,  x[:k] ]  (18 rows),
    # built from the aligned x block plus its wrap rows (no padded-value concat,
    # no shifted slices of a padded value).
    cols = []
    for b in range(B):                                  # tiny static batch loop (pack only)
        xb = x_ref[b * L:(b + 1) * L, :]                # (L, C); b*L is sublane-aligned
        taps = (
            jnp.concatenate([xb[L - PAD:, :], xb], axis=0),            # k = 0
            jnp.concatenate([xb[L - 1:, :], xb, xb[:1, :]], axis=0),   # k = 1
            jnp.concatenate([xb, xb[:PAD, :]], axis=0),                # k = 2
        )
        cols.append(jnp.concatenate(taps, axis=1))      # (LC, K*C) lane-packed
    lhs = jnp.concatenate(cols, axis=0)                 # (B*LC, K*C) = (36, 96)

    # ---- ONE MXU matmul: conv with BN scale already folded into the weights --
    acc = lax.dot_general(lhs, w_ref[...], (((1,), (0,)), ((), ())),
                          preferred_element_type=jnp.float32)          # (B*LC, C)
    y = acc + shift                                                    # bias + BN shift
    y = jnp.where(y > 0, y, jnp.exp(jnp.minimum(y, 0.0)) - 1.0)        # ELU (alpha=1)

    # ---- MaxPool1d(kernel=3, stride=2, padding=1) ----------------------------
    # out[b, p] = max(y_b[2p-1], y_b[2p], y_b[2p+1]); the p=0 pad row is -inf
    # and ELU > -1, so it never wins -> no pad rows needed.
    act_ref[...] = y                                     # aligned full store
    g0 = act_ref[pl.ds(0, R_OUT, stride=POOL_S), :]      # y[2p]   (both batches)
    g1 = act_ref[pl.ds(1, R_OUT, stride=POOL_S), :]      # y[2p+1] (both batches)
    # y[2p-1] = previous odd row, per batch; the duplicated first row of each
    # batch segment equals y_b[1], which is already in the p=0 window (harmless).
    gm = jnp.concatenate(
        [g1[0:1], g1[0:L_OUT - 1],                       # batch 0: [y0[1], y0[1..15 odd]]
         g1[L_OUT:L_OUT + 1], g1[L_OUT:2 * L_OUT - 1]],  # batch 1: [y1[1], y1[1..15 odd]]
        axis=0)
    out_ref[...] = jnp.maximum(jnp.maximum(g0, g1), gm)  # ONE aligned (B*L_OUT, C) store


@jax.jit
def conv_layer_forward(x, params):
    w, bias, gamma, beta, run_mean, run_var = params
    # Host-side parameter folding (eval-mode BN): done once per call here, once
    # per checkpoint load in a real model.
    scale = gamma * lax.rsqrt(run_var + EPS)                            # (C,)
    # torch weight layout (C_out, C_in, K) -> (K*C_in, C_out), BN scale folded.
    w_folded = jnp.transpose(w * scale[:, None, None], (2, 1, 0)).reshape(K * C, C)
    shift = ((bias - run_mean) * scale + beta).reshape(1, C)
    x_flat = x.reshape(R_IN, C)                                         # free reshape

    out_flat = pl.pallas_call(
        conv_layer_kernel,
        out_shape=jax.ShapeDtypeStruct((R_OUT, C), jnp.float32),
        grid_spec=pltpu.PrefetchScalarGridSpec(
            num_scalar_prefetch=0,
            grid=(1,),                                   # collapsed grid: one step
            in_specs=[
                pl.BlockSpec((R_IN, C), lambda i: (0, 0)),    # x (flattened)
                pl.BlockSpec((K * C, C), lambda i: (0, 0)),   # folded conv weights
                pl.BlockSpec((1, C), lambda i: (0, 0)),       # fused shift vector
            ],
            out_specs=pl.BlockSpec((R_OUT, C), lambda i: (0, 0)),
            scratch_shapes=[pltpu.VMEM((R_CONV, C), jnp.float32)],
        ),
        compiler_params=pltpu.CompilerParams(
            dimension_semantics=("arbitrary",)),
    )(x_flat, w_folded, shift)
    return out_flat.reshape(B, L_OUT, C)                               # free reshape


# ---------------- pure-JAX reference (for correctness check) ----------------
def reference(x, params):
    w, bias, gamma, beta, run_mean, run_var = params
    xc = jnp.transpose(x, (0, 2, 1))                                   # (B, C, L)
    xp = jnp.concatenate([xc[..., L - PAD:], xc, xc[..., :PAD]], axis=-1)  # circular pad
    y = lax.conv_general_dilated(
        xp, w, window_strides=(1,), padding='VALID',
        dimension_numbers=('NCH', 'OIH', 'NCH'),
        precision=lax.Precision.HIGHEST)                               # (B, C, LC)
    y = y + bias[None, :, None]
    y = (y - run_mean[None, :, None]) * lax.rsqrt(run_var + EPS)[None, :, None] \
        * gamma[None, :, None] + beta[None, :, None]                   # BatchNorm (eval)
    y = jax.nn.elu(y)
    y = lax.reduce_window(y, -jnp.inf, lax.max,
                          window_dimensions=(1, 1, POOL_K),
                          window_strides=(1, 1, POOL_S),
                          padding=((0, 0), (0, 0), (POOL_P, POOL_P)))
    return jnp.transpose(y, (0, 2, 1))                                 # (B, L_OUT, C)


def make_params(key):
    kw, kb, kg, kbe, km, kv = jax.random.split(key, 6)
    w = 0.1 * jax.random.normal(kw, (C, C, K), jnp.float32)            # torch (C_out, C_in, K)
    bias = 0.1 * jax.random.normal(kb, (C,), jnp.float32)
    gamma = 1.0 + 0.1 * jax.random.normal(kg, (C,), jnp.float32)
    beta = 0.1 * jax.random.normal(kbe, (C,), jnp.float32)
    run_mean = 0.1 * jax.random.normal(km, (C,), jnp.float32)
    run_var = 1.0 + 0.2 * jax.random.uniform(kv, (C,), jnp.float32)    # strictly positive
    return (w, bias, gamma, beta, run_mean, run_var)


if __name__ == "__main__":
    key = jax.random.PRNGKey(0)
    kx, kp = jax.random.split(key, 2)
    x = jax.random.normal(kx, (B, L, C), jnp.float32)
    params = make_params(kp)

    out = jax.block_until_ready(conv_layer_forward(x, params))
    ref = jax.block_until_ready(reference(x, params))

    assert out.shape == (B, L_OUT, C)
    np.testing.assert_allclose(np.asarray(out), np.asarray(ref), rtol=1e-4, atol=1e-4)
    print("KERNEL_OK")
</pallas_src>

<mosaic_0001>
module attributes {stable_mosaic.version = 11 : i64} {
  func.func @conv_layer_kernel(%arg0: i32, %arg1: memref<32x32xf32, #tpu.memory_space<vmem>>, %arg2: memref<96x32xf32, #tpu.memory_space<vmem>>, %arg3: memref<1x32xf32, #tpu.memory_space<vmem>>, %arg4: memref<18x32xf32, #tpu.memory_space<vmem>>, %arg5: memref<36x32xf32, #tpu.memory_space<vmem>>) attributes {dimension_semantics = [#tpu.dimension_semantics<arbitrary>], iteration_bounds = array<i64: 1>, scalar_prefetch = 0 : i64, scratch_operands = 1 : i64, tpu.core_type = #tpu.core_type<tc>, window_params = [{pipeline_mode = #tpu.pipeline_mode<synchronous>, transform_indices = @transform_0, window_bounds = array<i64: 32, 32>}, {pipeline_mode = #tpu.pipeline_mode<synchronous>, transform_indices = @transform_1, window_bounds = array<i64: 96, 32>}, {pipeline_mode = #tpu.pipeline_mode<synchronous>, transform_indices = @transform_2, window_bounds = array<i64: 1, 32>}, {pipeline_mode = #tpu.pipeline_mode<synchronous>, transform_indices = @transform_3, window_bounds = array<i64: 18, 32>}]} {
    %c0 = arith.constant 0 : index
    %c0_0 = arith.constant 0 : index
    %0 = vector.load %arg3[%c0, %c0_0] : memref<1x32xf32, #tpu.memory_space<vmem>>, vector<1x32xf32>
    %c0_1 = arith.constant 0 : index
    %c0_2 = arith.constant 0 : index
    %1 = vector.load %arg1[%c0_1, %c0_2] : memref<32x32xf32, #tpu.memory_space<vmem>>, vector<16x32xf32>
    %2 = vector.extract_strided_slice %1 {offsets = [14, 0], sizes = [2, 32], strides = [1, 1]} : vector<16x32xf32> to vector<2x32xf32>
    %3 = tpu.concatenate %2, %1 in 0 : vector<2x32xf32>, vector<16x32xf32> -> vector<18x32xf32>
    %4 = vector.extract_strided_slice %1 {offsets = [15, 0], sizes = [1, 32], strides = [1, 1]} : vector<16x32xf32> to vector<1x32xf32>
    %5 = vector.extract_strided_slice %1 {offsets = [0, 0], sizes = [1, 32], strides = [1, 1]} : vector<16x32xf32> to vector<1x32xf32>
    %6 = tpu.concatenate %4, %1, %5 in 0 : vector<1x32xf32>, vector<16x32xf32>, vector<1x32xf32> -> vector<18x32xf32>
    %7 = vector.extract_strided_slice %1 {offsets = [0, 0], sizes = [2, 32], strides = [1, 1]} : vector<16x32xf32> to vector<2x32xf32>
    %8 = tpu.concatenate %1, %7 in 0 : vector<16x32xf32>, vector<2x32xf32> -> vector<18x32xf32>
    %9 = tpu.concatenate %3, %6, %8 in 1 : vector<18x32xf32>, vector<18x32xf32>, vector<18x32xf32> -> vector<18x96xf32>
    %c16 = arith.constant 16 : index
    %c0_3 = arith.constant 0 : index
    %10 = vector.load %arg1[%c16, %c0_3] : memref<32x32xf32, #tpu.memory_space<vmem>>, vector<16x32xf32>
    %11 = vector.extract_strided_slice %10 {offsets = [14, 0], sizes = [2, 32], strides = [1, 1]} : vector<16x32xf32> to vector<2x32xf32>
    %12 = tpu.concatenate %11, %10 in 0 : vector<2x32xf32>, vector<16x32xf32> -> vector<18x32xf32>
    %13 = vector.extract_strided_slice %10 {offsets = [15, 0], sizes = [1, 32], strides = [1, 1]} : vector<16x32xf32> to vector<1x32xf32>
    %14 = vector.extract_strided_slice %10 {offsets = [0, 0], sizes = [1, 32], strides = [1, 1]} : vector<16x32xf32> to vector<1x32xf32>
    %15 = tpu.concatenate %13, %10, %14 in 0 : vector<1x32xf32>, vector<16x32xf32>, vector<1x32xf32> -> vector<18x32xf32>
    %16 = vector.extract_strided_slice %10 {offsets = [0, 0], sizes = [2, 32], strides = [1, 1]} : vector<16x32xf32> to vector<2x32xf32>
    %17 = tpu.concatenate %10, %16 in 0 : vector<16x32xf32>, vector<2x32xf32> -> vector<18x32xf32>
    %18 = tpu.concatenate %12, %15, %17 in 1 : vector<18x32xf32>, vector<18x32xf32>, vector<18x32xf32> -> vector<18x96xf32>
    %19 = tpu.concatenate %9, %18 in 0 : vector<18x96xf32>, vector<18x96xf32> -> vector<36x96xf32>
    %c0_4 = arith.constant 0 : index
    %c0_5 = arith.constant 0 : index
    %20 = vector.load %arg2[%c0_4, %c0_5] : memref<96x32xf32, #tpu.memory_space<vmem>>, vector<96x32xf32>
    %cst = arith.constant dense<0.000000e+00> : vector<36x32xf32>
    %21 = tpu.matmul %19, %20, %cst {dimension_numbers = #tpu.dot_dimension_numbers<[1], [0], [0], [1], [0, 0, 1, 1], [], []>} : vector<36x96xf32>, vector<96x32xf32>, vector<36x32xf32> -> vector<36x32xf32>
    %22 = vector.broadcast %0 : vector<1x32xf32> to vector<36x32xf32>
    %23 = arith.addf %21, %22 : vector<36x32xf32>
    %cst_6 = arith.constant 0.000000e+00 : f32
    %24 = vector.broadcast %cst_6 : f32 to vector<36x32xf32>
    %25 = arith.cmpf ogt, %23, %24 : vector<36x32xf32>
    %cst_7 = arith.constant 0.000000e+00 : f32
    %26 = vector.broadcast %cst_7 : f32 to vector<36x32xf32>
    %27 = arith.minimumf %23, %26 : vector<36x32xf32>
    %28 = math.exp %27 : vector<36x32xf32>
    %cst_8 = arith.constant 1.000000e+00 : f32
    %29 = vector.broadcast %cst_8 : f32 to vector<36x32xf32>
    %30 = arith.subf %28, %29 : vector<36x32xf32>
    %31 = arith.select %25, %23, %30 : vector<36x32xi1>, vector<36x32xf32>
    %c0_9 = arith.constant 0 : index
    %c0_10 = arith.constant 0 : index
    %32 = vector.load %arg5[%c0_9, %c0_10] : memref<36x32xf32, #tpu.memory_space<vmem>>, vector<36x32xf32>
    tpu.vector_store %arg5[%c0_9, %c0_10], %31 {strides = array<i32>} : memref<36x32xf32, #tpu.memory_space<vmem>>, vector<36x32xf32>,
    %c0_11 = arith.constant 0 : index
    %c0_12 = arith.constant 0 : index
    %33 = tpu.strided_load %arg5[%c0_11, %c0_12] {strides = array<i32: 2, 1>} : memref<36x32xf32, #tpu.memory_space<vmem>>, vector<18x32xf32>
    %c1 = arith.constant 1 : index
    %c0_13 = arith.constant 0 : index
    %34 = tpu.strided_load %arg5[%c1, %c0_13] {strides = array<i32: 2, 1>} : memref<36x32xf32, #tpu.memory_space<vmem>>, vector<18x32xf32>
    %35 = vector.extract_strided_slice %34 {offsets = [0, 0], sizes = [1, 32], strides = [1, 1]} : vector<18x32xf32> to vector<1x32xf32>
    %36 = vector.extract_strided_slice %34 {offsets = [0, 0], sizes = [8, 32], strides = [1, 1]} : vector<18x32xf32> to vector<8x32xf32>
    %37 = vector.extract_strided_slice %34 {offsets = [9, 0], sizes = [1, 32], strides = [1, 1]} : vector<18x32xf32> to vector<1x32xf32>
    %38 = vector.extract_strided_slice %34 {offsets = [9, 0], sizes = [8, 32], strides = [1, 1]} : vector<18x32xf32> to vector<8x32xf32>
    %39 = tpu.concatenate %35, %36, %37, %38 in 0 : vector<1x32xf32>, vector<8x32xf32>, vector<1x32xf32>, vector<8x32xf32> -> vector<18x32xf32>
    %40 = arith.maximumf %33, %34 : vector<18x32xf32>
    %41 = arith.maximumf %40, %39 : vector<18x32xf32>
    %c0_14 = arith.constant 0 : index
    %c0_15 = arith.constant 0 : index
    %42 = vector.load %arg4[%c0_14, %c0_15] : memref<18x32xf32, #tpu.memory_space<vmem>>, vector<18x32xf32>
    tpu.vector_store %arg4[%c0_14, %c0_15], %41 {strides = array<i32>} : memref<18x32xf32, #tpu.memory_space<vmem>>, vector<18x32xf32>,
    return
  }
  func.func @transform_0(%arg0: i32) -> (i32, i32) {
    %c0_i32 = arith.constant 0 : i32
    %c0_i32_0 = arith.constant 0 : i32
    %c0_i32_1 = arith.constant 0 : i32
    return %c0_i32, %c0_i32_0 : i32, i32
  }
  func.func @transform_1(%arg0: i32) -> (i32, i32) {
    %c0_i32 = arith.constant 0 : i32
    %c0_i32_0 = arith.constant 0 : i32
    %c0_i32_1 = arith.constant 0 : i32
    return %c0_i32, %c0_i32_0 : i32, i32
  }
  func.func @transform_2(%arg0: i32) -> (i32, i32) {
    %c0_i32 = arith.constant 0 : i32
    %c0_i32_0 = arith.constant 0 : i32
    %c0_i32_1 = arith.constant 0 : i32
    return %c0_i32, %c0_i32_0 : i32, i32
  }
  func.func @transform_3(%arg0: i32) -> (i32, i32) {
    %c0_i32 = arith.constant 0 : i32
    %c0_i32_0 = arith.constant 0 : i32
    %c0_i32_1 = arith.constant 0 : i32
    return %c0_i32, %c0_i32_0 : i32, i32
  }
}

</mosaic_0001>

<bundles_post_ra>
// kernel: conv_layer_forward.1
= control target key start
LH: loop header
LB: loop body
LE: loop exit
PB: predicated region body
PF: predicated region fallthrough
CT: control target
= control target key end

     0   :  { %vm29_vm0 = vcmask 1040384   ;;  %v409_v3 = vmov 0.0|0.0   ;;  %s410_s18 = smov 64   ;;  %vm21_vm1 = vcmask 1041408   ;;  %vm411_vm2 = vmmov 0   ;;  %s413_s28 = smov 32   ;;  %s563_s0 = inlined_call_operand.vmem [shape: f32[32,32], index: 0, kind: input, shape index: {}]   ;;  %s564_s1 = inlined_call_operand.vmem [shape: f32[96,32], index: 1, kind: input, shape index: {}]   ;;  %s565_s2 = inlined_call_operand.vmem [shape: f32[1,32], index: 2, kind: input, shape index: {}]   ;;  %s566_s3 = inlined_call_operand.vmem [shape: f32[18,32], index: 3, kind: output, shape index: {}]  }
   0x1   :  { %v15_v0 = vld [vmem:[%s563_s0] sm:$0xff]  ;;  %v55_v1 = vld [vmem:[%s563_s0 + $0x10] sm:$0xff]  ;;  %v56_v2 = vld [vmem:[%s563_s0 + $0x18] sm:$0xff]  ;;  %364 = vmatprep.subr.bf16.mxu0 %v409_v3  ;;  %382 = vmatprep.subr.bf16.mxu1 %v409_v3  ;;  %v412_v9 = vmov 0.0   ;;  %vm47_vm3 = vcmask 261120   ;;  %vm51_vm4 = vcmask 523264  }
   0x2   :  { %41 = vrot.lane.b32.xlu0 %v15_v0, %s410_s18  ;;  %v30_v4 = vrot.slane %v15_v0, 7  ;;  %v66_v5 = vrot.slane %v56_v2, 7  ;;  %v68_v6 = vrot.slane %v55_v1, 7  ;;  %v16_v7 = vld [vmem:[%s563_s0 + $0x8] sm:$0xff]  ;;  %v101_v8 = vld [vmem:[%s564_s1] sm:$0xff]  ;;  %349 = vmatprep.mubr.msk.f32.mxu0 %vm411_vm2, %v412_v9  ;;  %v103_v12 = vld [vmem:[%s564_s1 + $0x10] sm:$0xff] }
   0x3   :  { %v27_v10 = vrot.slane %v16_v7, 7  ;;  %v102_v11 = vld [vmem:[%s564_s1 + $0x8] sm:$0xff]  ;;  %v104_v13 = vld [vmem:[%s564_s1 + $0x18] sm:$0xff]  ;;  %v463_v14 = vrot.slane %v56_v2, 6  ;;  %v61_v15 = vrot.slane %v55_v1, 6  ;;  %358 = vmatprep.mubr.msk.f32.mxu1 %vm411_vm2, %v412_v9  ;;  %v22_v16 = vrot.slane %v15_v0, 6 }
   0x4   :  { %v71_v17 = vsel %vm29_vm0, %v66_v5, %v68_v6  ;;  %v365_v18 = vpack.c.bf16 %v102_v11, %v101_v8  ;;  %v69_v21 = vsel %vm29_vm0, %v68_v6, %v66_v5  ;;  %v368_v22 = vpack.c.bf16 %v104_v13, %v103_v12  ;;  %v105_v25 = vld [vmem:[%s564_s1 + $0x20] sm:$0xff]  ;;  %v106_v26 = vld [vmem:[%s564_s1 + $0x28] sm:$0xff]  ;;  %v107_v31 = vld [vmem:[%s564_s1 + $0x30] sm:$0xff] }
   0x5   :  { %73 = vrot.lane.b32.xlu1 %v71_v17, %s413_s28  ;;  %v33_v19 = vsel %vm29_vm0, %v27_v10, %v30_v4  ;;  %v65_v20 = vsel %vm21_vm1, %v463_v14, %v61_v15  ;;  %v18_v23 = vrot.slane %v16_v7, 6  ;;  %v62_v24 = vsel %vm21_vm1, %v61_v15, %v463_v14  ;;  %v108_v32 = vld [vmem:[%s564_s1 + $0x38] sm:$0xff]  ;;  %v109_v34 = vld [vmem:[%s564_s1 + $0x40] sm:$0xff]  ;;  %v110_v35 = vld [vmem:[%s564_s1 + $0x48] sm:$0xff] }
   0x6   :  { %35 = vrot.lane.b32.xlu0 %v33_v19, %s413_s28  ;;  %366 = vmatpush3.bf16.msra.mxu0 %v365_v18  ;;  %v371_v29 = vpack.c.bf16 %v106_v26, %v105_v25  ;;  %v31_v30 = vsel %vm29_vm0, %v30_v4, %v27_v10  ;;  %v374_v33 = vpack.c.bf16 %v108_v32, %v107_v31  ;;  %v111_v37 = vld [vmem:[%s564_s1 + $0x50] sm:$0xff]  ;;  %v112_v38 = vld [vmem:[%s564_s1 + $0x58] sm:$0xff]  ;;  %vm119_vm5 = vcmask 785408  }
   0x7   :  { %367 = vmatprep.subr.bf16.mxu0 %v409_v3  ;;  %388 = vmatpush3.bf16.msra.mxu1 %v365_v18  ;;  %v26_v27 = vsel %vm21_vm1, %v18_v23, %v22_v16  ;;  %v23_v28 = vsel %vm21_vm1, %v22_v16, %v18_v23  ;;  %v377_v36 = vpack.c.bf16 %v110_v35, %v109_v34  ;;  %vm257_vm9 = vcmask 257024  }
   0x8   :  { %383 = vmatprep.subr.bf16.mxu1 %v409_v3  ;;  %v380_v39 = vpack.c.bf16 %v112_v38, %v111_v37  ;;  %vm291_vm12 = vcmask 254976  }
   0x9   :  { %75 = vrot.lane.b32.xlu1 %v69_v21, %s413_s28 }
   0xa   :  { %79 = vrot.lane.b32.xlu0 %v55_v1, %s410_s18  ;;  %369 = vmatpush3.bf16.msra.mxu0 %v368_v22 }
   0xb   :  { %370 = vmatprep.subr.bf16.mxu0 %v409_v3  ;;  %389 = vmatpush3.bf16.msra.mxu1 %v368_v22 }
   0xc   :  { %384 = vmatprep.subr.bf16.mxu1 %v409_v3 }
   0xd   :  { %81 = vrot.lane.b32.xlu1 %v56_v2, %s410_s18  ;;  %v297_v2 = vld [vmem:[%s565_s2] ss:$0 sm:$0xff] }
   0xe   :  { %37 = vrot.lane.b32.xlu0 %v31_v30, %s413_s28  ;;  %372 = vmatpush3.bf16.msra.mxu0 %v371_v29 }
   0xf   :  { %373 = vmatprep.subr.bf16.mxu0 %v409_v3  ;;  %390 = vmatpush3.bf16.msra.mxu1 %v371_v29 }
  0x10   :  { %385 = vmatprep.subr.bf16.mxu1 %v409_v3 }
  0x11   :  { %43 = vrot.lane.b32.xlu1 %v16_v7, %s410_s18 }
  0x12   :  { %375 = vmatpush3.bf16.msra.mxu0 %v374_v33 }
  0x13   :  { %376 = vmatprep.subr.bf16.mxu0 %v409_v3  ;;  %391 = vmatpush3.bf16.msra.mxu1 %v374_v33 }
  0x14   :  { %386 = vmatprep.subr.bf16.mxu1 %v409_v3 }
  0x16   :  { %378 = vmatpush3.bf16.msra.mxu0 %v377_v36 }
  0x17   :  { %379 = vmatprep.subr.bf16.mxu0 %v409_v3  ;;  %392 = vmatpush3.bf16.msra.mxu1 %v377_v36 }
  0x18   :  { %387 = vmatprep.subr.bf16.mxu1 %v409_v3 }
  0x1a   :  { %381 = vmatpush3.bf16.msra.mxu0 %v380_v39 }
  0x1b   :  { %393 = vmatpush3.bf16.msra.mxu1 %v380_v39 }
  0x74   :  { %v42_v40 = vpop.permute.xlu0 %41 }
  0x77   :  { %v74_v41 = vpop.permute.xlu1 %73 }
  0x78   :  { %v36_v42 = vpop.permute.xlu0 %35  ;;  %v85_v46 = vsel %vm47_vm3, %v65_v20, %v74_v41  ;;  %v87_v49 = vsel %vm47_vm3, %v463_v14, %v74_v41 }
  0x79   :  { %v48_v43 = vsel %vm47_vm3, %v26_v27, %v36_v42  ;;  %v50_v47 = vsel %vm47_vm3, %v18_v23, %v36_v42 }
  0x7a   :  { %v52_v44 = vsel %vm51_vm4, %v48_v43, %v42_v40  ;;  %v54_v53 = vsel %vm51_vm4, %v50_v47, %v42_v40 }
  0x7b   :  { %v76_v45 = vpop.permute.xlu1 %75  ;;  %350 = vmatmul.mubr.msk.f32.vlgmr.msra.gmra.mrb[0].mxu0 %vm119_vm5, %v52_v44 }
  0x7c   :  { %v80_v48 = vpop.permute.xlu0 %79  ;;  %352 = vmatprep.mubr.msk.f32.mxu0 %vm411_vm2, %v412_v9  ;;  %v86_v54 = vsel %vm47_vm3, %v62_v24, %v76_v45 }
  0x7d   :  { %v88_v50 = vsel %vm51_vm4, %v85_v46, %v80_v48  ;;  %v90_v51 = vsel %vm51_vm4, %v87_v49, %v80_v48 }
  0x7e   :  { %v94_v52 = vrot.slane %v88_v50, 6  ;;  %v97_v59 = vrot.slane %v90_v51, 6 }
  0x7f   :  { %v82_v55 = vpop.permute.xlu1 %81 }
  0x80   :  { %v89_v56 = vsel %vm51_vm4, %v86_v54, %v82_v55  ;;  %v38_v57 = vpop.permute.xlu0 %37  ;;  %v100_v58 = vsel %vm21_vm1, %v54_v53, %v94_v52 }
  0x81   :  { %v95_v60 = vrot.slane %v89_v56, 6  ;;  %v49_v61 = vsel %vm47_vm3, %v23_v28, %v38_v57 }
  0x83   :  { %v44_v62 = vpop.permute.xlu1 %43  ;;  %v96_v63 = vsel %vm21_vm1, %v94_v52, %v95_v60  ;;  %v98_v0 = vsel %vm21_vm1, %v95_v60, %v97_v59 }
  0x84   :  { %v53_v1 = vsel %vm51_vm4, %v49_v61, %v44_v62  ;;  %359 = vmatmul.mubr.msk.f32.vlgmr.msra.gmra.mrb[0].mxu1 %vm119_vm5, %v96_v63 }
  0x85   :  { %353 = vmatmul.mubr.msk.f32.gmra.mrb[2].mxu0 %vm119_vm5, %v53_v1  ;;  %361 = vmatprep.mubr.msk.f32.mxu1 %vm411_vm2, %v412_v9 }
  0x86   :  { %355 = vmatprep.mubr.msk.f32.mxu0 %vm411_vm2, %v412_v9 }
  0x88   :  { %362 = vmatmul.mubr.msk.f32.gmra.mrb[2].mxu1 %vm119_vm5, %v98_v0 }
  0x89   :  { %356 = vmatmul.mubr.msk.f32.gmra.mrb[4].mxu0 %vm119_vm5, %v100_v58 }
 0x14e   :  { %v199_v3 = vpop.f32.mrb[0].mxu0 }
 0x14f   :  { %v200_v4 = vadd.f32 %v297_v2, %v199_v3  ;;  %v351_v5 = vpop.f32.mrb[1].mxu0 }
 0x151   :  { %v228_v6 = vmin.f32 %v200_v4, 0.0  ;;  %vm223_vm6 = vcmp.gt.f32.partialorder %v200_v4, 0.0 }
 0x153   :  { %v233_v7 = vmul.f32 1.442695, %v228_v6 }
 0x155   :  { %399 = vpow2.f32 %v233_v7 }
 0x157   :  { %v214_v8 = vpop.f32.mrb[0].mxu1 }
 0x158   :  { %v215_v10 = vadd.f32 %v297_v2, %v214_v8  ;;  %v204_v11 = vpop.f32.mrb[2].mxu0  ;;  %v360_v12 = vpop.f32.mrb[1].mxu1 }
 0x159   :  { %v205_v13 = vadd.f32 %v297_v2, %v204_v11  ;;  %v354_v9 = vpop.f32.mrb[3].mxu0 }
 0x15a   :  { %v231_v14 = vmin.f32 %v215_v10, 0.0  ;;  %vm226_vm7 = vcmp.gt.f32.partialorder %v215_v10, 0.0 }
 0x15b   :  { %v229_v15 = vmin.f32 %v205_v13, 0.0  ;;  %v219_v16 = vpop.f32.mrb[2].mxu1  ;;  %vm224_vm8 = vcmp.gt.f32.partialorder %v205_v13, 0.0 }
 0x15c   :  { %v239_v17 = vmul.f32 1.442695, %v231_v14  ;;  %v220_v18 = vadd.f32 %v297_v2, %v219_v16  ;;  %v209_v19 = vpop.f32.mrb[4].mxu0  ;;  %v363_v20 = vpop.f32.mrb[3].mxu1 }
 0x15d   :  { %v235_v21 = vmul.f32 1.442695, %v229_v15  ;;  %v210_v22 = vadd.f32 %v297_v2, %v209_v19  ;;  %v357_v23 = vpop.f32.mrb[5].mxu0 }
 0x15e   :  { %401 = vpow2.f32 %v239_v17  ;;  %v232_v24 = vmin.f32 %v220_v18, 0.0  ;;  %vm227_vm10 = vcmp.gt.f32.partialorder %v220_v18, 0.0 }
 0x15f   :  { %v400_v25 = vpop.eup %399  ;;  %403 = vpow2.f32 %v235_v21  ;;  %v230_v26 = vmin.f32 %v210_v22, 0.0  ;;  %vm225_vm11 = vcmp.gt.f32.partialorder %v210_v22, 0.0 }
 0x160   :  { %v303_v27 = vadd.f32 -1.0, %v400_v25  ;;  %v241_v28 = vmul.f32 1.442695, %v232_v24 }
 0x161   :  { %v237_v29 = vmul.f32 1.442695, %v230_v26 }
 0x162   :  { %v248_v30 = vsel %vm223_vm6, %v200_v4, %v303_v27  ;;  %405 = vpow2.f32 %v241_v28 }
 0x163   :  { %253 = vst.msk [vmem:[#allocation2] sm:$0xff] %vm47_vm3, %v248_v30  ;;  %407 = vpow2.f32 %v237_v29 }
 0x168   :  { %v402_v31 = vpop.eup %401 }
 0x169   :  { %v404_v32 = vpop.eup %403  ;;  %v306_v33 = vadd.f32 -1.0, %v402_v31 }
 0x16a   :  { %v304_v34 = vadd.f32 -1.0, %v404_v32 }
 0x16b   :  { %v251_v35 = vsel %vm226_vm7, %v215_v10, %v306_v33 }
 0x16c   :  { %v406_v36 = vpop.eup %405  ;;  %256 = vst.msk [vmem:[#allocation2 + $0x18] sm:$0xff] %vm47_vm3, %v251_v35  ;;  %v249_v37 = vsel %vm224_vm8, %v205_v13, %v304_v34 }
 0x16d   :  { %v408_v38 = vpop.eup %407  ;;  %254 = vst.msk [vmem:[#allocation2 + $0x8] sm:$0xff] %vm47_vm3, %v249_v37  ;;  %v307_v39 = vadd.f32 -1.0, %v406_v36 }
 0x16e   :  { %v305_v40 = vadd.f32 -1.0, %v408_v38 }
 0x16f   :  { %v252_v41 = vsel %vm227_vm10, %v220_v18, %v307_v39 }
 0x170   :  { %258 = vst.msk [vmem:[#allocation2 + $0x20] sm:$0xf] %vm257_vm9, %v252_v41  ;;  %v250_v42 = vsel %vm225_vm11, %v210_v22, %v305_v40 }
 0x171   :  { %255 = vst.msk [vmem:[#allocation2 + $0x10] sm:$0xff] %vm47_vm3, %v250_v42 }
 0x174   :  { %v259_v43 = vld [vmem:[#allocation2] ss:$2 sm:$0xff]  ;;  %v265_v44 = vld [vmem:[#allocation2 + $0x1] ss:$2 sm:$0xff] }
 0x175   :  { %v271_v45 = vrot.slane %v265_v44, 7  ;;  %v283_v46 = vmax.f32 %v259_v43, %v265_v44 }
 0x177   :  { %v280_v47 = vsel %vm29_vm0, %v265_v44, %v271_v45  ;;  %v263_v48 = vld [vmem:[#allocation2 + $0x20] ss:$2 sm:$0x3]  ;;  %v269_v49 = vld [vmem:[#allocation2 + $0x21] ss:$2 sm:$0x3] }
 0x178   :  { %v286_v50 = vmax.f32 %v283_v46, %v280_v47  ;;  %v276_v51 = vrot.slane %v269_v49, 7  ;;  %v261_v52 = vld [vmem:[#allocation2 + $0x10] ss:$2 sm:$0xff]  ;;  %v267_v53 = vld [vmem:[#allocation2 + $0x11] ss:$2 sm:$0xff]  ;;  %v285_v57 = vmax.f32 %v263_v48, %v269_v49 }
 0x179   :  { %v275_v54 = vrot.slane %v267_v53, 7  ;;  %v281_v55 = vsel %vm29_vm0, %v271_v45, %v267_v53  ;;  %v284_v56 = vmax.f32 %v261_v52, %v267_v53 }
 0x17a   :  { %289 = vst.msk [vmem:[%s566_s3] sm:$0xff] %vm47_vm3, %v286_v50 }
 0x17b   :  { %v277_v58 = vsel %vm29_vm0, %v275_v54, %v276_v51  ;;  %v282_v59 = vsel %vm21_vm1, %v281_v55, %v275_v54 }
 0x17c   :  { %v287_v60 = vmax.f32 %v284_v56, %v282_v59  ;;  %v288_v61 = vmax.f32 %v285_v57, %v277_v58 }
 0x17e   :  { %290 = vst.msk [vmem:[%s566_s3 + $0x8] sm:$0xff] %vm47_vm3, %v287_v60 }
 0x17f   :  { %292 = vst.msk [vmem:[%s566_s3 + $0x10] sm:$0x3] %vm291_vm12, %v288_v61 }

</bundles_post_ra>
